<compile_context>
chip_gen: v7x
topology: tpu7x:2x2x1
jax: 0.10.0
libtpu: 0.0.40
codegen_flags: <defaults>
</compile_context>

<pallas_src>
import jax
import jax.numpy as jnp
from jax import lax
from jax.experimental import pallas as pl
from jax.experimental.pallas import tpu as pltpu

# Dimensions fixed by the PyTorch module.
EMBED_DIM = 50              # self.embedding_dim
HIDDEN_DIM = 30             # self.encoder_dim
HIDDEN_PAD = 32             # per-gate padded width (lane friendly)
GATE_DIM = 4 * HIDDEN_PAD   # 128 — fully lane-dense fused gate axis

# PyTorch gate order is (i, f, g, o); we pack as (i, f, o, g) so the three
# "sigmoid" gates are one contiguous 96-lane slab and the "tanh" gate is last.
_GATE_ORDER = (0, 1, 3, 2)


def _lstm_classifier_kernel(x_ref, wih_ref, whh_ref, b_ref, wcls_ref, bcls_ref,
                            out_ref, xp_scr):
    TB = x_ref.shape[0]          # T * Bp  (flattened, sublane aligned)
    Bp = out_ref.shape[0]        # padded batch (multiple of 8)
    T = TB // Bp
    Hp = HIDDEN_PAD
    G = GATE_DIM

    # ---- Input projection: ONE fused MXU push for all T steps ---------------
    # xp[t*Bp:(t+1)*Bp] = x_t @ W_ih_packed + b_packed, computed in a single
    # (TB, E)@(E, 128) dot; bias broadcast hoisted out of the recurrence.
    xp_scr[...] = (jnp.dot(x_ref[...], wih_ref[...],
                           preferred_element_type=jnp.float32)
                   + b_ref[...])

    # ---- Hoisted loop invariants --------------------------------------------
    whh = whh_ref[...]                                    # (Hp, G), vreg-resident
    lane = lax.broadcasted_iota(jnp.int32, (1, G), 1)
    is_sig = lane < 3 * Hp                                # i|f|o lanes vs g lanes
    half_or_one = jnp.where(is_sig, 0.5, 1.0).astype(jnp.float32)   # pre-scale & post-mul
    half_or_zero = jnp.where(is_sig, 0.5, 0.0).astype(jnp.float32)  # post-add

    # ---- Serial recurrence: one (Bp,Hp)@(Hp,128) dot + 1 EUP pass per step --
    def step(t, carry):
        h, c = carry
        row = pl.multiple_of(t * Bp, 8)                   # sublane-tile aligned
        pre = xp_scr[pl.ds(row, Bp), :] + jnp.dot(
            h, whh, preferred_element_type=jnp.float32)
        # sigmoid(x) = 0.5*tanh(x/2) + 0.5 on i|f|o lanes; plain tanh on g lanes:
        # single 128-lane tanh, then one per-lane fma.
        gates = jnp.tanh(pre * half_or_one) * half_or_one + half_or_zero
        i_g = gates[:, 0 * Hp:1 * Hp]
        f_g = gates[:, 1 * Hp:2 * Hp]
        o_g = gates[:, 2 * Hp:3 * Hp]
        g_g = gates[:, 3 * Hp:4 * Hp]
        c_new = f_g * c + i_g * g_g
        h_new = o_g * jnp.tanh(c_new)
        return h_new, c_new

    # Zero initial state (reset_initial_state in the PyTorch module).
    # NOTE: must stay exactly zero for padded-lane correctness (see header).
    h0 = jnp.zeros((Bp, Hp), jnp.float32)
    c0 = jnp.zeros((Bp, Hp), jnp.float32)
    unroll = True if T <= 64 else 8       # full unroll at small T, partial if large
    h_last, _ = lax.fori_loop(0, T, step, (h0, c0), unroll=unroll)

    # ---- last_out = lstm_out[-1]; logit = Linear(last_out) ------------------
    out_ref[...] = (jnp.dot(h_last, wcls_ref[...],
                            preferred_element_type=jnp.float32)
                    + bcls_ref[...])


def _pack_params(params):
    """Pack per-gate (i,f,g,o) params into lane-dense (i,f,o,g) 4*Hp layouts."""
    H, Hp = HIDDEN_DIM, HIDDEN_PAD

    def pack(w4):   # w4: (4, D, H) -> (D, 4*Hp), per-gate zero pad, reordered
        cols = [jnp.pad(w4[g], ((0, 0), (0, Hp - H))) for g in _GATE_ORDER]
        return jnp.concatenate(cols, axis=1)

    wih_p = pack(params["w_ih"])                                   # (E, 128)
    whh_rows = jnp.pad(params["w_hh"], ((0, 0), (0, Hp - H), (0, 0)))
    whh_p = pack(whh_rows)                                         # (Hp, 128)
    b_p = pack(params["b"])                                        # (1, 128)
    wcls_p = jnp.pad(params["w_cls"], ((0, Hp - H), (0, 0)))       # (Hp, C)
    return wih_p, whh_p, b_p, wcls_p


@jax.jit
def sentiment_forward(token_ids, params):
    """token_ids: int32 (batch, num_steps) -> logits float32 (batch, num_classes)."""
    # Glue: embedding lookup + transpose to seq-major (T, B, E).
    # TODO(synk): fuse this gather into the kernel (scalar-prefetched ids + DMA
    #             gather) to drop the (B,T,E) HBM round trip at real sizes.
    emb = jnp.take(params["embedding"], token_ids, axis=0)      # (B, T, E)
    B, T, E = emb.shape
    x = jnp.transpose(emb, (1, 0, 2)).astype(jnp.float32)       # (T, B, E)

    # Pad batch to a sublane multiple so every (B, .) operand is unmasked.
    Bp = 8 * pl.cdiv(B, 8)
    if Bp != B:
        x = jnp.pad(x, ((0, 0), (0, Bp - B), (0, 0)))
    x2d = x.reshape(T * Bp, E)                                   # flattened, 2-D

    Hp, G = HIDDEN_PAD, GATE_DIM
    C = params["b_cls"].shape[-1]
    wih_p, whh_p, b_p, wcls_p = _pack_params(params)

    # Whole sequence is VMEM-resident: ~ T*Bp*(2*E + G)*4 bytes (+ weights).
    # At real T*B this needs a batch-tile grid axis (and, on v7x, a "parallel"
    # batch axis across the two TensorCores); trivial at toy size.
    logits_padded = pl.pallas_call(
        _lstm_classifier_kernel,
        out_shape=jax.ShapeDtypeStruct((Bp, C), jnp.float32),
        grid_spec=pltpu.PrefetchScalarGridSpec(
            num_scalar_prefetch=0,
            grid=(1,),                                    # single invocation
            in_specs=[
                pl.BlockSpec((T * Bp, E), lambda i: (0, 0)),   # whole sequence, 2-D
                pl.BlockSpec((E, G), lambda i: (0, 0)),        # W_ih packed
                pl.BlockSpec((Hp, G), lambda i: (0, 0)),       # W_hh packed
                pl.BlockSpec((1, G), lambda i: (0, 0)),        # combined bias
                pl.BlockSpec((Hp, C), lambda i: (0, 0)),       # classifier W
                pl.BlockSpec((1, C), lambda i: (0, 0)),        # classifier b
            ],
            out_specs=pl.BlockSpec((Bp, C), lambda i: (0, 0)),
            scratch_shapes=[pltpu.VMEM((T * Bp, G), jnp.float32)],  # hoisted x-proj
        ),
        compiler_params=pltpu.CompilerParams(
            dimension_semantics=("arbitrary",),
            vmem_limit_bytes=32 * 1024 * 1024),
    )(x2d, wih_p, whh_p, b_p, wcls_p, params["b_cls"])

    return logits_padded[:B]                              # drop batch padding


def init_params(key, num_vocabs, num_classes):
    ks = jax.random.split(key, 6)
    s = 0.1
    return dict(
        embedding=jax.random.normal(ks[0], (num_vocabs, EMBED_DIM), jnp.float32) * s,
        w_ih=jax.random.normal(ks[1], (4, EMBED_DIM, HIDDEN_DIM), jnp.float32) * s,
        w_hh=jax.random.normal(ks[2], (4, HIDDEN_DIM, HIDDEN_DIM), jnp.float32) * s,
        b=jax.random.normal(ks[3], (4, 1, HIDDEN_DIM), jnp.float32) * s,
        w_cls=jax.random.normal(ks[4], (HIDDEN_DIM, num_classes), jnp.float32) * s,
        b_cls=jax.random.normal(ks[5], (1, num_classes), jnp.float32) * s,
    )


def reference_forward(token_ids, params):
    """Pure-JAX reference mirroring PyTorch nn.LSTM semantics (gate order i,f,g,o)."""
    emb = jnp.take(params["embedding"], token_ids, axis=0)
    x = jnp.transpose(emb, (1, 0, 2)).astype(jnp.float32)
    B = x.shape[1]
    h = jnp.zeros((B, HIDDEN_DIM), jnp.float32)
    c = jnp.zeros((B, HIDDEN_DIM), jnp.float32)
    for t in range(x.shape[0]):
        xt = x[t]
        pre = [xt @ params["w_ih"][g] + h @ params["w_hh"][g] + params["b"][g]
               for g in range(4)]
        i = jax.nn.sigmoid(pre[0])
        f = jax.nn.sigmoid(pre[1])
        g_ = jnp.tanh(pre[2])
        o = jax.nn.sigmoid(pre[3])
        c = f * c + i * g_
        h = o * jnp.tanh(c)
    return h @ params["w_cls"] + params["b_cls"]


if __name__ == "__main__":
    NUM_VOCABS = 20
    NUM_CLASSES = 3
    BATCH = 4
    NUM_STEPS = 8

    key = jax.random.PRNGKey(0)
    k_tok, k_par = jax.random.split(key)
    params = init_params(k_par, NUM_VOCABS, NUM_CLASSES)
    token_ids = jax.random.randint(k_tok, (BATCH, NUM_STEPS), 0, NUM_VOCABS,
                                   dtype=jnp.int32)

    logits = sentiment_forward(token_ids, params)
    logits = jax.block_until_ready(logits)

    ref = reference_forward(token_ids, params)
    assert logits.shape == (BATCH, NUM_CLASSES)
    assert jnp.allclose(logits, ref, atol=2e-5, rtol=2e-5)

    print("KERNEL_OK")
</pallas_src>

<mosaic_0001>
module attributes {stable_mosaic.version = 11 : i64} {
  func.func @_lstm_classifier_kernel(%arg0: i32, %arg1: memref<64x50xf32, #tpu.memory_space<vmem>>, %arg2: memref<50x128xf32, #tpu.memory_space<vmem>>, %arg3: memref<32x128xf32, #tpu.memory_space<vmem>>, %arg4: memref<1x128xf32, #tpu.memory_space<vmem>>, %arg5: memref<32x3xf32, #tpu.memory_space<vmem>>, %arg6: memref<1x3xf32, #tpu.memory_space<vmem>>, %arg7: memref<8x3xf32, #tpu.memory_space<vmem>>, %arg8: memref<64x128xf32, #tpu.memory_space<vmem>>) attributes {dimension_semantics = [#tpu.dimension_semantics<arbitrary>], iteration_bounds = array<i64: 1>, scalar_prefetch = 0 : i64, scratch_operands = 1 : i64, tpu.core_type = #tpu.core_type<tc>, window_params = [{pipeline_mode = #tpu.pipeline_mode<synchronous>, transform_indices = @transform_0, window_bounds = array<i64: 64, 50>}, {pipeline_mode = #tpu.pipeline_mode<synchronous>, transform_indices = @transform_1, window_bounds = array<i64: 50, 128>}, {pipeline_mode = #tpu.pipeline_mode<synchronous>, transform_indices = @transform_2, window_bounds = array<i64: 32, 128>}, {pipeline_mode = #tpu.pipeline_mode<synchronous>, transform_indices = @transform_3, window_bounds = array<i64: 1, 128>}, {pipeline_mode = #tpu.pipeline_mode<synchronous>, transform_indices = @transform_4, window_bounds = array<i64: 32, 3>}, {pipeline_mode = #tpu.pipeline_mode<synchronous>, transform_indices = @transform_5, window_bounds = array<i64: 1, 3>}, {pipeline_mode = #tpu.pipeline_mode<synchronous>, transform_indices = @transform_6, window_bounds = array<i64: 8, 3>}]} {
    %c0 = arith.constant 0 : index
    %c0_0 = arith.constant 0 : index
    %0 = vector.load %arg1[%c0, %c0_0] : memref<64x50xf32, #tpu.memory_space<vmem>>, vector<64x50xf32>
    %c0_1 = arith.constant 0 : index
    %c0_2 = arith.constant 0 : index
    %1 = vector.load %arg2[%c0_1, %c0_2] : memref<50x128xf32, #tpu.memory_space<vmem>>, vector<50x128xf32>
    %cst = arith.constant dense<0.000000e+00> : vector<64x128xf32>
    %2 = tpu.matmul %0, %1, %cst {dimension_numbers = #tpu.dot_dimension_numbers<[1], [0], [0], [1], [0, 0, 1, 1], [], []>} : vector<64x50xf32>, vector<50x128xf32>, vector<64x128xf32> -> vector<64x128xf32>
    %c0_3 = arith.constant 0 : index
    %c0_4 = arith.constant 0 : index
    %3 = vector.load %arg4[%c0_3, %c0_4] : memref<1x128xf32, #tpu.memory_space<vmem>>, vector<1x128xf32>
    %4 = vector.broadcast %3 : vector<1x128xf32> to vector<64x128xf32>
    %5 = arith.addf %2, %4 : vector<64x128xf32>
    %c0_5 = arith.constant 0 : index
    %c0_6 = arith.constant 0 : index
    %6 = vector.load %arg8[%c0_5, %c0_6] : memref<64x128xf32, #tpu.memory_space<vmem>>, vector<64x128xf32>
    tpu.vector_store %arg8[%c0_5, %c0_6], %5 {strides = array<i32>} : memref<64x128xf32, #tpu.memory_space<vmem>>, vector<64x128xf32>,
    %c0_7 = arith.constant 0 : index
    %c0_8 = arith.constant 0 : index
    %7 = vector.load %arg3[%c0_7, %c0_8] : memref<32x128xf32, #tpu.memory_space<vmem>>, vector<32x128xf32>
    %8 = tpu.iota {dimensions = array<i32: 1>} : vector<1x128xi32>
    %c96_i32 = arith.constant 96 : i32
    %9 = vector.broadcast %c96_i32 : i32 to vector<1x128xi32>
    %10 = arith.cmpi slt, %8, %9 : vector<1x128xi32>
    %cst_9 = arith.constant 5.000000e-01 : f32
    %cst_10 = arith.constant 1.000000e+00 : f32
    %11 = vector.broadcast %cst_9 : f32 to vector<1x128xf32>
    %12 = vector.broadcast %cst_10 : f32 to vector<1x128xf32>
    %13 = arith.select %10, %11, %12 : vector<1x128xi1>, vector<1x128xf32>
    %cst_11 = arith.constant 5.000000e-01 : f32
    %cst_12 = arith.constant 0.000000e+00 : f32
    %14 = vector.broadcast %cst_11 : f32 to vector<1x128xf32>
    %15 = vector.broadcast %cst_12 : f32 to vector<1x128xf32>
    %16 = arith.select %10, %14, %15 : vector<1x128xi1>, vector<1x128xf32>
    %cst_13 = arith.constant 0.000000e+00 : f32
    %17 = vector.broadcast %cst_13 : f32 to vector<8x32xf32>
    %cst_14 = arith.constant 0.000000e+00 : f32
    %18 = vector.broadcast %cst_14 : f32 to vector<8x32xf32>
    %c0_i32 = arith.constant 0 : i32
    %c8_i32 = arith.constant 8 : i32
    %19 = arith.muli %c0_i32, %c8_i32 : i32
    %20 = tpu.assume_multiple %19, 8 : i32
    %21 = arith.index_cast %20 : i32 to index
    %c0_15 = arith.constant 0 : index
    %22 = vector.load %arg8[%21, %c0_15] : memref<64x128xf32, #tpu.memory_space<vmem>>, vector<8x128xf32>
    %cst_16 = arith.constant dense<0.000000e+00> : vector<8x128xf32>
    %23 = tpu.matmul %17, %7, %cst_16 {dimension_numbers = #tpu.dot_dimension_numbers<[1], [0], [0], [1], [0, 0, 1, 1], [], []>} : vector<8x32xf32>, vector<32x128xf32>, vector<8x128xf32> -> vector<8x128xf32>
    %24 = arith.addf %22, %23 : vector<8x128xf32>
    %25 = vector.broadcast %13 : vector<1x128xf32> to vector<8x128xf32>
    %26 = arith.mulf %24, %25 : vector<8x128xf32>
    %27 = math.tanh %26 : vector<8x128xf32>
    %28 = vector.broadcast %13 : vector<1x128xf32> to vector<8x128xf32>
    %29 = arith.mulf %27, %28 : vector<8x128xf32>
    %30 = vector.broadcast %16 : vector<1x128xf32> to vector<8x128xf32>
    %31 = arith.addf %29, %30 : vector<8x128xf32>
    %32 = vector.extract_strided_slice %31 {offsets = [0, 0], sizes = [8, 32], strides = [1, 1]} : vector<8x128xf32> to vector<8x32xf32>
    %33 = vector.extract_strided_slice %31 {offsets = [0, 32], sizes = [8, 32], strides = [1, 1]} : vector<8x128xf32> to vector<8x32xf32>
    %34 = vector.extract_strided_slice %31 {offsets = [0, 64], sizes = [8, 32], strides = [1, 1]} : vector<8x128xf32> to vector<8x32xf32>
    %35 = vector.extract_strided_slice %31 {offsets = [0, 96], sizes = [8, 32], strides = [1, 1]} : vector<8x128xf32> to vector<8x32xf32>
    %36 = arith.mulf %33, %18 : vector<8x32xf32>
    %37 = arith.mulf %32, %35 : vector<8x32xf32>
    %38 = arith.addf %36, %37 : vector<8x32xf32>
    %39 = math.tanh %38 : vector<8x32xf32>
    %40 = arith.mulf %34, %39 : vector<8x32xf32>
    %c1_i32 = arith.constant 1 : i32
    %c8_i32_17 = arith.constant 8 : i32
    %41 = arith.muli %c1_i32, %c8_i32_17 : i32
    %42 = tpu.assume_multiple %41, 8 : i32
    %43 = arith.index_cast %42 : i32 to index
    %c0_18 = arith.constant 0 : index
    %44 = vector.load %arg8[%43, %c0_18] : memref<64x128xf32, #tpu.memory_space<vmem>>, vector<8x128xf32>
    %cst_19 = arith.constant dense<0.000000e+00> : vector<8x128xf32>
    %45 = tpu.matmul %40, %7, %cst_19 {dimension_numbers = #tpu.dot_dimension_numbers<[1], [0], [0], [1], [0, 0, 1, 1], [], []>} : vector<8x32xf32>, vector<32x128xf32>, vector<8x128xf32> -> vector<8x128xf32>
    %46 = arith.addf %44, %45 : vector<8x128xf32>
    %47 = vector.broadcast %13 : vector<1x128xf32> to vector<8x128xf32>
    %48 = arith.mulf %46, %47 : vector<8x128xf32>
    %49 = math.tanh %48 : vector<8x128xf32>
    %50 = vector.broadcast %13 : vector<1x128xf32> to vector<8x128xf32>
    %51 = arith.mulf %49, %50 : vector<8x128xf32>
    %52 = vector.broadcast %16 : vector<1x128xf32> to vector<8x128xf32>
    %53 = arith.addf %51, %52 : vector<8x128xf32>
    %54 = vector.extract_strided_slice %53 {offsets = [0, 0], sizes = [8, 32], strides = [1, 1]} : vector<8x128xf32> to vector<8x32xf32>
    %55 = vector.extract_strided_slice %53 {offsets = [0, 32], sizes = [8, 32], strides = [1, 1]} : vector<8x128xf32> to vector<8x32xf32>
    %56 = vector.extract_strided_slice %53 {offsets = [0, 64], sizes = [8, 32], strides = [1, 1]} : vector<8x128xf32> to vector<8x32xf32>
    %57 = vector.extract_strided_slice %53 {offsets = [0, 96], sizes = [8, 32], strides = [1, 1]} : vector<8x128xf32> to vector<8x32xf32>
    %58 = arith.mulf %55, %38 : vector<8x32xf32>
    %59 = arith.mulf %54, %57 : vector<8x32xf32>
    %60 = arith.addf %58, %59 : vector<8x32xf32>
    %61 = math.tanh %60 : vector<8x32xf32>
    %62 = arith.mulf %56, %61 : vector<8x32xf32>
    %c2_i32 = arith.constant 2 : i32
    %c8_i32_20 = arith.constant 8 : i32
    %63 = arith.muli %c2_i32, %c8_i32_20 : i32
    %64 = tpu.assume_multiple %63, 8 : i32
    %65 = arith.index_cast %64 : i32 to index
    %c0_21 = arith.constant 0 : index
    %66 = vector.load %arg8[%65, %c0_21] : memref<64x128xf32, #tpu.memory_space<vmem>>, vector<8x128xf32>
    %cst_22 = arith.constant dense<0.000000e+00> : vector<8x128xf32>
    %67 = tpu.matmul %62, %7, %cst_22 {dimension_numbers = #tpu.dot_dimension_numbers<[1], [0], [0], [1], [0, 0, 1, 1], [], []>} : vector<8x32xf32>, vector<32x128xf32>, vector<8x128xf32> -> vector<8x128xf32>
    %68 = arith.addf %66, %67 : vector<8x128xf32>
    %69 = vector.broadcast %13 : vector<1x128xf32> to vector<8x128xf32>
    %70 = arith.mulf %68, %69 : vector<8x128xf32>
    %71 = math.tanh %70 : vector<8x128xf32>
    %72 = vector.broadcast %13 : vector<1x128xf32> to vector<8x128xf32>
    %73 = arith.mulf %71, %72 : vector<8x128xf32>
    %74 = vector.broadcast %16 : vector<1x128xf32> to vector<8x128xf32>
    %75 = arith.addf %73, %74 : vector<8x128xf32>
    %76 = vector.extract_strided_slice %75 {offsets = [0, 0], sizes = [8, 32], strides = [1, 1]} : vector<8x128xf32> to vector<8x32xf32>
    %77 = vector.extract_strided_slice %75 {offsets = [0, 32], sizes = [8, 32], strides = [1, 1]} : vector<8x128xf32> to vector<8x32xf32>
    %78 = vector.extract_strided_slice %75 {offsets = [0, 64], sizes = [8, 32], strides = [1, 1]} : vector<8x128xf32> to vector<8x32xf32>
    %79 = vector.extract_strided_slice %75 {offsets = [0, 96], sizes = [8, 32], strides = [1, 1]} : vector<8x128xf32> to vector<8x32xf32>
    %80 = arith.mulf %77, %60 : vector<8x32xf32>
    %81 = arith.mulf %76, %79 : vector<8x32xf32>
    %82 = arith.addf %80, %81 : vector<8x32xf32>
    %83 = math.tanh %82 : vector<8x32xf32>
    %84 = arith.mulf %78, %83 : vector<8x32xf32>
    %c3_i32 = arith.constant 3 : i32
    %c8_i32_23 = arith.constant 8 : i32
    %85 = arith.muli %c3_i32, %c8_i32_23 : i32
    %86 = tpu.assume_multiple %85, 8 : i32
    %87 = arith.index_cast %86 : i32 to index
    %c0_24 = arith.constant 0 : index
    %88 = vector.load %arg8[%87, %c0_24] : memref<64x128xf32, #tpu.memory_space<vmem>>, vector<8x128xf32>
    %cst_25 = arith.constant dense<0.000000e+00> : vector<8x128xf32>
    %89 = tpu.matmul %84, %7, %cst_25 {dimension_numbers = #tpu.dot_dimension_numbers<[1], [0], [0], [1], [0, 0, 1, 1], [], []>} : vector<8x32xf32>, vector<32x128xf32>, vector<8x128xf32> -> vector<8x128xf32>
    %90 = arith.addf %88, %89 : vector<8x128xf32>
    %91 = vector.broadcast %13 : vector<1x128xf32> to vector<8x128xf32>
    %92 = arith.mulf %90, %91 : vector<8x128xf32>
    %93 = math.tanh %92 : vector<8x128xf32>
    %94 = vector.broadcast %13 : vector<1x128xf32> to vector<8x128xf32>
    %95 = arith.mulf %93, %94 : vector<8x128xf32>
    %96 = vector.broadcast %16 : vector<1x128xf32> to vector<8x128xf32>
    %97 = arith.addf %95, %96 : vector<8x128xf32>
    %98 = vector.extract_strided_slice %97 {offsets = [0, 0], sizes = [8, 32], strides = [1, 1]} : vector<8x128xf32> to vector<8x32xf32>
    %99 = vector.extract_strided_slice %97 {offsets = [0, 32], sizes = [8, 32], strides = [1, 1]} : vector<8x128xf32> to vector<8x32xf32>
    %100 = vector.extract_strided_slice %97 {offsets = [0, 64], sizes = [8, 32], strides = [1, 1]} : vector<8x128xf32> to vector<8x32xf32>
    %101 = vector.extract_strided_slice %97 {offsets = [0, 96], sizes = [8, 32], strides = [1, 1]} : vector<8x128xf32> to vector<8x32xf32>
    %102 = arith.mulf %99, %82 : vector<8x32xf32>
    %103 = arith.mulf %98, %101 : vector<8x32xf32>
    %104 = arith.addf %102, %103 : vector<8x32xf32>
    %105 = math.tanh %104 : vector<8x32xf32>
    %106 = arith.mulf %100, %105 : vector<8x32xf32>
    %c4_i32 = arith.constant 4 : i32
    %c8_i32_26 = arith.constant 8 : i32
    %107 = arith.muli %c4_i32, %c8_i32_26 : i32
    %108 = tpu.assume_multiple %107, 8 : i32
    %109 = arith.index_cast %108 : i32 to index
    %c0_27 = arith.constant 0 : index
    %110 = vector.load %arg8[%109, %c0_27] : memref<64x128xf32, #tpu.memory_space<vmem>>, vector<8x128xf32>
    %cst_28 = arith.constant dense<0.000000e+00> : vector<8x128xf32>
    %111 = tpu.matmul %106, %7, %cst_28 {dimension_numbers = #tpu.dot_dimension_numbers<[1], [0], [0], [1], [0, 0, 1, 1], [], []>} : vector<8x32xf32>, vector<32x128xf32>, vector<8x128xf32> -> vector<8x128xf32>
    %112 = arith.addf %110, %111 : vector<8x128xf32>
    %113 = vector.broadcast %13 : vector<1x128xf32> to vector<8x128xf32>
    %114 = arith.mulf %112, %113 : vector<8x128xf32>
    %115 = math.tanh %114 : vector<8x128xf32>
    %116 = vector.broadcast %13 : vector<1x128xf32> to vector<8x128xf32>
    %117 = arith.mulf %115, %116 : vector<8x128xf32>
    %118 = vector.broadcast %16 : vector<1x128xf32> to vector<8x128xf32>
    %119 = arith.addf %117, %118 : vector<8x128xf32>
    %120 = vector.extract_strided_slice %119 {offsets = [0, 0], sizes = [8, 32], strides = [1, 1]} : vector<8x128xf32> to vector<8x32xf32>
    %121 = vector.extract_strided_slice %119 {offsets = [0, 32], sizes = [8, 32], strides = [1, 1]} : vector<8x128xf32> to vector<8x32xf32>
    %122 = vector.extract_strided_slice %119 {offsets = [0, 64], sizes = [8, 32], strides = [1, 1]} : vector<8x128xf32> to vector<8x32xf32>
    %123 = vector.extract_strided_slice %119 {offsets = [0, 96], sizes = [8, 32], strides = [1, 1]} : vector<8x128xf32> to vector<8x32xf32>
    %124 = arith.mulf %121, %104 : vector<8x32xf32>
    %125 = arith.mulf %120, %123 : vector<8x32xf32>
    %126 = arith.addf %124, %125 : vector<8x32xf32>
    %127 = math.tanh %126 : vector<8x32xf32>
    %128 = arith.mulf %122, %127 : vector<8x32xf32>
    %c5_i32 = arith.constant 5 : i32
    %c8_i32_29 = arith.constant 8 : i32
    %129 = arith.muli %c5_i32, %c8_i32_29 : i32
    %130 = tpu.assume_multiple %129, 8 : i32
    %131 = arith.index_cast %130 : i32 to index
    %c0_30 = arith.constant 0 : index
    %132 = vector.load %arg8[%131, %c0_30] : memref<64x128xf32, #tpu.memory_space<vmem>>, vector<8x128xf32>
    %cst_31 = arith.constant dense<0.000000e+00> : vector<8x128xf32>
    %133 = tpu.matmul %128, %7, %cst_31 {dimension_numbers = #tpu.dot_dimension_numbers<[1], [0], [0], [1], [0, 0, 1, 1], [], []>} : vector<8x32xf32>, vector<32x128xf32>, vector<8x128xf32> -> vector<8x128xf32>
    %134 = arith.addf %132, %133 : vector<8x128xf32>
    %135 = vector.broadcast %13 : vector<1x128xf32> to vector<8x128xf32>
    %136 = arith.mulf %134, %135 : vector<8x128xf32>
    %137 = math.tanh %136 : vector<8x128xf32>
    %138 = vector.broadcast %13 : vector<1x128xf32> to vector<8x128xf32>
    %139 = arith.mulf %137, %138 : vector<8x128xf32>
    %140 = vector.broadcast %16 : vector<1x128xf32> to vector<8x128xf32>
    %141 = arith.addf %139, %140 : vector<8x128xf32>
    %142 = vector.extract_strided_slice %141 {offsets = [0, 0], sizes = [8, 32], strides = [1, 1]} : vector<8x128xf32> to vector<8x32xf32>
    %143 = vector.extract_strided_slice %141 {offsets = [0, 32], sizes = [8, 32], strides = [1, 1]} : vector<8x128xf32> to vector<8x32xf32>
    %144 = vector.extract_strided_slice %141 {offsets = [0, 64], sizes = [8, 32], strides = [1, 1]} : vector<8x128xf32> to vector<8x32xf32>
    %145 = vector.extract_strided_slice %141 {offsets = [0, 96], sizes = [8, 32], strides = [1, 1]} : vector<8x128xf32> to vector<8x32xf32>
    %146 = arith.mulf %143, %126 : vector<8x32xf32>
    %147 = arith.mulf %142, %145 : vector<8x32xf32>
    %148 = arith.addf %146, %147 : vector<8x32xf32>
    %149 = math.tanh %148 : vector<8x32xf32>
    %150 = arith.mulf %144, %149 : vector<8x32xf32>
    %c6_i32 = arith.constant 6 : i32
    %c8_i32_32 = arith.constant 8 : i32
    %151 = arith.muli %c6_i32, %c8_i32_32 : i32
    %152 = tpu.assume_multiple %151, 8 : i32
    %153 = arith.index_cast %152 : i32 to index
    %c0_33 = arith.constant 0 : index
    %154 = vector.load %arg8[%153, %c0_33] : memref<64x128xf32, #tpu.memory_space<vmem>>, vector<8x128xf32>
    %cst_34 = arith.constant dense<0.000000e+00> : vector<8x128xf32>
    %155 = tpu.matmul %150, %7, %cst_34 {dimension_numbers = #tpu.dot_dimension_numbers<[1], [0], [0], [1], [0, 0, 1, 1], [], []>} : vector<8x32xf32>, vector<32x128xf32>, vector<8x128xf32> -> vector<8x128xf32>
    %156 = arith.addf %154, %155 : vector<8x128xf32>
    %157 = vector.broadcast %13 : vector<1x128xf32> to vector<8x128xf32>
    %158 = arith.mulf %156, %157 : vector<8x128xf32>
    %159 = math.tanh %158 : vector<8x128xf32>
    %160 = vector.broadcast %13 : vector<1x128xf32> to vector<8x128xf32>
    %161 = arith.mulf %159, %160 : vector<8x128xf32>
    %162 = vector.broadcast %16 : vector<1x128xf32> to vector<8x128xf32>
    %163 = arith.addf %161, %162 : vector<8x128xf32>
    %164 = vector.extract_strided_slice %163 {offsets = [0, 0], sizes = [8, 32], strides = [1, 1]} : vector<8x128xf32> to vector<8x32xf32>
    %165 = vector.extract_strided_slice %163 {offsets = [0, 32], sizes = [8, 32], strides = [1, 1]} : vector<8x128xf32> to vector<8x32xf32>
    %166 = vector.extract_strided_slice %163 {offsets = [0, 64], sizes = [8, 32], strides = [1, 1]} : vector<8x128xf32> to vector<8x32xf32>
    %167 = vector.extract_strided_slice %163 {offsets = [0, 96], sizes = [8, 32], strides = [1, 1]} : vector<8x128xf32> to vector<8x32xf32>
    %168 = arith.mulf %165, %148 : vector<8x32xf32>
    %169 = arith.mulf %164, %167 : vector<8x32xf32>
    %170 = arith.addf %168, %169 : vector<8x32xf32>
    %171 = math.tanh %170 : vector<8x32xf32>
    %172 = arith.mulf %166, %171 : vector<8x32xf32>
    %c7_i32 = arith.constant 7 : i32
    %c8_i32_35 = arith.constant 8 : i32
    %173 = arith.muli %c7_i32, %c8_i32_35 : i32
    %174 = tpu.assume_multiple %173, 8 : i32
    %175 = arith.index_cast %174 : i32 to index
    %c0_36 = arith.constant 0 : index
    %176 = vector.load %arg8[%175, %c0_36] : memref<64x128xf32, #tpu.memory_space<vmem>>, vector<8x128xf32>
    %cst_37 = arith.constant dense<0.000000e+00> : vector<8x128xf32>
    %177 = tpu.matmul %172, %7, %cst_37 {dimension_numbers = #tpu.dot_dimension_numbers<[1], [0], [0], [1], [0, 0, 1, 1], [], []>} : vector<8x32xf32>, vector<32x128xf32>, vector<8x128xf32> -> vector<8x128xf32>
    %178 = arith.addf %176, %177 : vector<8x128xf32>
    %179 = vector.broadcast %13 : vector<1x128xf32> to vector<8x128xf32>
    %180 = arith.mulf %178, %179 : vector<8x128xf32>
    %181 = math.tanh %180 : vector<8x128xf32>
    %182 = vector.broadcast %13 : vector<1x128xf32> to vector<8x128xf32>
    %183 = arith.mulf %181, %182 : vector<8x128xf32>
    %184 = vector.broadcast %16 : vector<1x128xf32> to vector<8x128xf32>
    %185 = arith.addf %183, %184 : vector<8x128xf32>
    %186 = vector.extract_strided_slice %185 {offsets = [0, 0], sizes = [8, 32], strides = [1, 1]} : vector<8x128xf32> to vector<8x32xf32>
    %187 = vector.extract_strided_slice %185 {offsets = [0, 32], sizes = [8, 32], strides = [1, 1]} : vector<8x128xf32> to vector<8x32xf32>
    %188 = vector.extract_strided_slice %185 {offsets = [0, 64], sizes = [8, 32], strides = [1, 1]} : vector<8x128xf32> to vector<8x32xf32>
    %189 = vector.extract_strided_slice %185 {offsets = [0, 96], sizes = [8, 32], strides = [1, 1]} : vector<8x128xf32> to vector<8x32xf32>
    %190 = arith.mulf %187, %170 : vector<8x32xf32>
    %191 = arith.mulf %186, %189 : vector<8x32xf32>
    %192 = arith.addf %190, %191 : vector<8x32xf32>
    %193 = math.tanh %192 : vector<8x32xf32>
    %194 = arith.mulf %188, %193 : vector<8x32xf32>
    %c8_i32_38 = arith.constant 8 : i32
    %c0_39 = arith.constant 0 : index
    %c0_40 = arith.constant 0 : index
    %195 = vector.load %arg5[%c0_39, %c0_40] : memref<32x3xf32, #tpu.memory_space<vmem>>, vector<32x3xf32>
    %cst_41 = arith.constant dense<0.000000e+00> : vector<8x3xf32>
    %196 = tpu.matmul %194, %195, %cst_41 {dimension_numbers = #tpu.dot_dimension_numbers<[1], [0], [0], [1], [0, 0, 1, 1], [], []>} : vector<8x32xf32>, vector<32x3xf32>, vector<8x3xf32> -> vector<8x3xf32>
    %c0_42 = arith.constant 0 : index
    %c0_43 = arith.constant 0 : index
    %197 = vector.load %arg6[%c0_42, %c0_43] : memref<1x3xf32, #tpu.memory_space<vmem>>, vector<1x3xf32>
    %198 = vector.broadcast %197 : vector<1x3xf32> to vector<8x3xf32>
    %199 = arith.addf %196, %198 : vector<8x3xf32>
    %c0_44 = arith.constant 0 : index
    %c0_45 = arith.constant 0 : index
    %200 = vector.load %arg7[%c0_44, %c0_45] : memref<8x3xf32, #tpu.memory_space<vmem>>, vector<8x3xf32>
    tpu.vector_store %arg7[%c0_44, %c0_45], %199 {strides = array<i32>} : memref<8x3xf32, #tpu.memory_space<vmem>>, vector<8x3xf32>,
    return
  }
  func.func @transform_0(%arg0: i32) -> (i32, i32) {
    %c0_i32 = arith.constant 0 : i32
    %c0_i32_0 = arith.constant 0 : i32
    %c0_i32_1 = arith.constant 0 : i32
    return %c0_i32, %c0_i32_0 : i32, i32
  }
  func.func @transform_1(%arg0: i32) -> (i32, i32) {
    %c0_i32 = arith.constant 0 : i32
    %c0_i32_0 = arith.constant 0 : i32
    %c0_i32_1 = arith.constant 0 : i32
    return %c0_i32, %c0_i32_0 : i32, i32
  }
  func.func @transform_2(%arg0: i32) -> (i32, i32) {
    %c0_i32 = arith.constant 0 : i32
    %c0_i32_0 = arith.constant 0 : i32
    %c0_i32_1 = arith.constant 0 : i32
    return %c0_i32, %c0_i32_0 : i32, i32
  }
  func.func @transform_3(%arg0: i32) -> (i32, i32) {
    %c0_i32 = arith.constant 0 : i32
    %c0_i32_0 = arith.constant 0 : i32
    %c0_i32_1 = arith.constant 0 : i32
    return %c0_i32, %c0_i32_0 : i32, i32
  }
  func.func @transform_4(%arg0: i32) -> (i32, i32) {
    %c0_i32 = arith.constant 0 : i32
    %c0_i32_0 = arith.constant 0 : i32
    %c0_i32_1 = arith.constant 0 : i32
    return %c0_i32, %c0_i32_0 : i32, i32
  }
  func.func @transform_5(%arg0: i32) -> (i32, i32) {
    %c0_i32 = arith.constant 0 : i32
    %c0_i32_0 = arith.constant 0 : i32
    %c0_i32_1 = arith.constant 0 : i32
    return %c0_i32, %c0_i32_0 : i32, i32
  }
  func.func @transform_6(%arg0: i32) -> (i32, i32) {
    %c0_i32 = arith.constant 0 : i32
    %c0_i32_0 = arith.constant 0 : i32
    %c0_i32_1 = arith.constant 0 : i32
    return %c0_i32, %c0_i32_0 : i32, i32
  }
}

</mosaic_0001>

<bundles_post_ra>
// kernel: sentiment_forward.1
= control target key start
LH: loop header
LB: loop body
LE: loop exit
PB: predicated region body
PF: predicated region fallthrough
CT: control target
= control target key end

     0   :  { %v1386_v3 = vmov 0.0|0.0   ;;  %vm45_vm0 = vcmask 408576   ;;  %vm1387_vm1 = vmmov 0   ;;  %v1388_v7 = vmov 0.0   ;;  %s1391_s23 = smov 64   ;;  %s1658_s1 = inlined_call_operand.vmem [shape: f32[50,128], index: 1, kind: input, shape index: {}]   ;;  %s1659_s2 = inlined_call_operand.vmem [shape: f32[32,128], index: 2, kind: input, shape index: {}]   ;;  %s1660_s0 = inlined_call_operand.vmem [shape: f32[64,50], index: 0, kind: input, shape index: {}]   ;;  %s1661_s3 = inlined_call_operand.vmem [shape: f32[1,128], index: 3, kind: input, shape index: {}]   ;;  %s1662_s4 = inlined_call_operand.vmem [shape: f32[32,3], index: 4, kind: input, shape index: {}]   ;;  %s1663_s5 = inlined_call_operand.vmem [shape: f32[1,3], index: 5, kind: input, shape index: {}]   ;;  %s1664_s6 = inlined_call_operand.vmem [shape: f32[8,3], index: 6, kind: output, shape index: {}]  }
   0x1   :  { %v31_v0 = vld [vmem:[%s1658_s1] sm:$0xff]  ;;  %v32_v1 = vld [vmem:[%s1658_s1 + $0x8] sm:$0xff]  ;;  %v33_v2 = vld [vmem:[%s1658_s1 + $0x10] sm:$0xff]  ;;  %1294 = vmatprep.subr.bf16.mxu1 %v1386_v3  ;;  %1191 = vmatprep.mubr.msk.f32.mxu1 %vm1387_vm1, %v1388_v7  ;;  %vm70_vm2 = vcmask 1041408   ;;  %v191_v20 = vlaneseq  ;;  %v1389_v28 = vmov 1.0   ;;  %vm197_vm4 = vcmask 261120  }
   0x2   :  { %v1282_v4 = vpack.c.bf16 %v32_v1, %v31_v0  ;;  %v34_v5 = vld [vmem:[%s1658_s1 + $0x18] sm:$0xff]  ;;  %v35_v6 = vld [vmem:[%s1658_s1 + $0x20] sm:$0xff]  ;;  %v36_v9 = vld [vmem:[%s1658_s1 + $0x28] sm:$0xff]  ;;  %vm1072_vm5 = vcmask 23552  }
   0x3   :  { %v1286_v8 = vpack.c.bf16 %v34_v5, %v33_v2  ;;  %v187_v10 = vld [vmem:[%s1659_s2] sm:$0xff]  ;;  %v188_v11 = vld [vmem:[%s1659_s2 + $0x8] sm:$0xff]  ;;  %v189_v14 = vld [vmem:[%s1659_s2 + $0x10] sm:$0xff]  ;;  %v1290_v16 = vpack.c.bf16 %v36_v9, %v35_v6  ;;  %v192_v22 = vand.u32 127, %v191_v20 }
   0x4   :  { %1283 = vmatprep.subr.bf16.mxu0 %v1282_v4  ;;  %v1454_v12 = vpack.c.bf16 %v188_v11, %v187_v10  ;;  %v23_v13 = vld [vmem:[%s1660_s0] sm:$0xff]  ;;  %v190_v15 = vld [vmem:[%s1659_s2 + $0x18] sm:$0xff]  ;;  %v37_v18 = vld [vmem:[%s1658_s1 + $0x30] sm:$0x3] }
   0x5   :  { %1285 = vmatpush3.bf16.msra.mxu0 %v1282_v4  ;;  %1171 = vmatprep.mubr.msk.f32.mxu0 %vm45_vm0, %v23_v13  ;;  %v1467_v17 = vpack.c.bf16 %v190_v15, %v189_v14  ;;  %v24_v19 = vld [vmem:[%s1660_s0 + $0x8] sm:$0xff]  ;;  %v1494_v24 = vld [vmem:[%s1661_s3] ss:$0 sm:$0xff]  ;;  %vm193_vm3 = vcmp.lt.s32.totalorder %v192_v22, 96  ;;  %s1390_s3 = smov 32   ;;  %v25_v58 = vld [vmem:[%s1660_s0 + $0x10] sm:$0xff] }
   0x6   :  { %1287 = vmatprep.subr.bf16.mxu0 %v1286_v8  ;;  %1296 = vmatpush3.bf16.msra.mxu1 %v1454_v12  ;;  %v1497_v29 = vsel %vm193_vm3, 0.5, %v1389_v28  ;;  %v1501_v33 = vsel %vm193_vm3, 0.5, %v1388_v7  ;;  %v26_v59 = vld [vmem:[%s1660_s0 + $0x18] sm:$0xff]  ;;  %v28_v20 = vld [vmem:[%s1660_s0 + $0x28] sm:$0xff] }
   0x7   :  { %1297 = vmatprep.subr.bf16.mxu1 %v1386_v3  ;;  %v30_v22 = vld [vmem:[%s1660_s0 + $0x38] sm:$0xff] }
   0x9   :  { %1289 = vmatpush3.bf16.msra.mxu0 %v1286_v8 }
   0xa   :  { %1291 = vmatprep.subr.bf16.mxu0 %v1290_v16  ;;  %1299 = vmatpush3.bf16.msra.mxu1 %v1467_v17 }
   0xb   :  { %1300 = vmatprep.subr.bf16.mxu1 %v1386_v3 }
   0xd   :  { %1293 = vmatpush3.bf16.msra.mxu0 %v1290_v16  ;;  %1192 = vmatmul.mubr.f32.vlgmr.msra.gmra.mrb[0].mxu1 %v1388_v7 }
   0xe   :  { %1169 = vmatprep.subr.msk.mxu0 %vm70_vm2, %v37_v18  ;;  %1302 = vmatpush3.bf16.msra.mxu1 %v1454_v12 }
   0xf   :  { %1303 = vmatprep.subr.bf16.mxu1 %v1386_v3  ;;  %1202 = vmatprep.mubr.msk.f32.mxu1 %vm1387_vm1, %v1388_v7 }
  0x11   :  { %1170 = vmatpush3.msk.msra.mxu0 %vm70_vm2, %v37_v18 }
  0x12   :  { %1172 = vmatmul.mubr.msk.f32.vlgmr.msra.gmra.mrb[0].mxu0 %vm45_vm0, %v24_v19  ;;  %1305 = vmatpush3.bf16.msra.mxu1 %v1467_v17  ;;  %v27_v19 = vld [vmem:[%s1660_s0 + $0x20] sm:$0xff] }
  0x13   :  { %1306 = vmatprep.subr.bf16.mxu1 %v1386_v3  ;;  %1312 = vmatprep.subr.bf16.mxu0 %v1386_v3 }
  0x14   :  { %1314 = vmatpush3.bf16.msra.mxu0 %v1454_v12  ;;  %1174 = vmatprep.mubr.msk.f32.mxu0 %vm45_vm0, %v25_v58 }
  0x15   :  { %1315 = vmatprep.subr.bf16.mxu0 %v1386_v3 }
  0x16   :  { %1175 = vmatmul.mubr.msk.f32.gmra.mrb[2].mxu0 %vm45_vm0, %v26_v59 }
  0x17   :  { %1177 = vmatprep.mubr.msk.f32.mxu0 %vm45_vm0, %v27_v19 }
  0x18   :  { %1317 = vmatpush3.bf16.msra.mxu0 %v1467_v17 }
  0x19   :  { %1324 = vmatprep.subr.bf16.mxu0 %v1386_v3 }
  0x1a   :  { %1178 = vmatmul.mubr.msk.f32.gmra.mrb[4].mxu0 %vm45_vm0, %v28_v20 }
  0xe0   :  { %v267_v21 = vpop.f32.mrb[0].mxu1 }
  0xe1   :  { %v1193_v23 = vpop.f32.mrb[1].mxu1 }
  0xe5   :  { %v1173_v25 = vpop.f32.mrb[0].mxu0 }
  0xe6   :  { %v140_v26 = vpop.f32.mrb[1].mxu0  ;;  %v146_v45 = vadd.f32 %v1173_v25, %v1494_v24 }
  0xe7   :  { %v141_v27 = vadd.f32 %v1494_v24, %v140_v26 }
  0xe9   :  { %v271_v30 = vadd.f32 %v267_v21, %v141_v27  ;;  %v1176_v63 = vpop.f32.mrb[2].mxu0  ;;  %v29_v21 = vld [vmem:[%s1660_s0 + $0x30] sm:$0xff] }
  0xea   :  { %v150_v0 = vpop.f32.mrb[3].mxu0  ;;  %1180 = vmatprep.mubr.msk.f32.mxu0 %vm45_vm0, %v29_v21 }
  0xeb   :  { %v272_v31 = vmul.f32 %v271_v30, %v1497_v29  ;;  %v151_v2 = vadd.f32 %v1494_v24, %v150_v0  ;;  %1181 = vmatmul.mubr.msk.f32.gmra.mrb[6].mxu0 %vm45_vm0, %v30_v22 }
  0xec   :  { %1224 = vmatprep.mubr.msk.f32.mxu0 %vm1387_vm1, %v1388_v7 }
  0xed   :  { %1354 = vtanh.f32 %v272_v31  ;;  %v1565_v27 = vpop.f32.mrb[4].mxu0 }
  0xee   :  { %v160_v28 = vpop.f32.mrb[5].mxu0 }
  0xf7   :  { %v1355_v32 = vpop.eup %1354 }
  0xf8   :  { %v274_v34 = vmul.f32 %v1355_v32, %v1497_v29 }
  0xfa   :  { %v275_v35 = vadd.f32 %v274_v34, %v1501_v33  ;;  %v156_v34 = vadd.f32 %v1176_v63, %v1494_v24 }
  0xfc   :  { %278 = vrot.lane.b32.xlu0 %v275_v35, %s1390_s3  ;;  %v276_v38 = vmul.f32 0.0, %v275_v35 }
 0x16e   :  { %v279_v36 = vpop.permute.xlu0 %278 }
 0x16f   :  { %v281_v37 = vmul.f32 %v279_v36, %v275_v35 }
 0x171   :  { %283 = vrot.lane.b32.xlu0 %v281_v37, %s1390_s3 }
 0x1be   :  { %v1567_v30 = vpop.f32.mrb[6].mxu0 }
 0x1bf   :  { %v1569_v31 = vpop.f32.mrb[7].mxu0 }
 0x1e3   :  { %v284_v39 = vpop.permute.xlu0 %283 }
 0x1e4   :  { %v286_v40 = vadd.f32 %v284_v39, %v276_v38 }
 0x1e6   :  { %1356 = vtanh.f32 %v286_v40 }
 0x1f0   :  { %v1357_v41 = vpop.eup %1356 }
 0x1f1   :  { %289 = vrot.lane.b32.xlu1 %v1357_v41, %s1390_s3 }
 0x263   :  { %v290_v42 = vpop.permute.xlu1 %289 }
 0x264   :  { %v292_v43 = vmul.f32 %v290_v42, %v275_v35 }
 0x266   :  { %296 = vrot.lane.b32.xlu1 %v292_v43, %s1391_s23 }
 0x2d8   :  { %v297_v44 = vpop.permute.xlu1 %296 }
 0x2d9   :  { %1203 = vmatmul.mubr.msk.f32.vlgmr.msra.gmra.mrb[2].mxu1 %vm197_vm4, %v297_v44 }
 0x2da   :  { %1308 = vmatpush3.bf16.msra.mxu1 %v1454_v12  ;;  %1213 = vmatprep.mubr.msk.f32.mxu1 %vm1387_vm1, %v1388_v7 }
 0x2db   :  { %1309 = vmatprep.subr.bf16.mxu1 %v1386_v3 }
 0x2de   :  { %1311 = vmatpush3.bf16.msra.mxu1 %v1467_v17 }
 0x2df   :  { %1318 = vmatprep.subr.bf16.mxu1 %v1386_v3 }
 0x3ac   :  { %v366_v46 = vpop.f32.mrb[2].mxu1 }
 0x3ad   :  { %v370_v47 = vadd.f32 %v366_v46, %v146_v45  ;;  %v1204_v48 = vpop.f32.mrb[3].mxu1 }
 0x3af   :  { %v371_v49 = vmul.f32 %v370_v47, %v1497_v29 }
 0x3b1   :  { %1358 = vtanh.f32 %v371_v49 }
 0x3bb   :  { %v1359_v50 = vpop.eup %1358 }
 0x3bc   :  { %v373_v51 = vmul.f32 %v1359_v50, %v1497_v29 }
 0x3be   :  { %v374_v52 = vadd.f32 %v373_v51, %v1501_v33  ;;  %v161_v51 = vadd.f32 %v1494_v24, %v160_v28 }
 0x3c0   :  { %377 = vrot.lane.b32.xlu0 %v374_v52, %s1390_s3  ;;  %v375_v55 = vmul.f32 %v374_v52, %v286_v40 }
 0x432   :  { %v378_v53 = vpop.permute.xlu0 %377 }
 0x433   :  { %v380_v54 = vmul.f32 %v378_v53, %v374_v52 }
 0x435   :  { %382 = vrot.lane.b32.xlu1 %v380_v54, %s1390_s3 }
 0x4a7   :  { %v383_v56 = vpop.permute.xlu1 %382 }
 0x4a8   :  { %v385_v57 = vadd.f32 %v383_v56, %v375_v55 }
 0x4aa   :  { %1360 = vtanh.f32 %v385_v57 }
 0x4b4   :  { %v1361_v60 = vpop.eup %1360 }
 0x4b5   :  { %388 = vrot.lane.b32.xlu0 %v1361_v60, %s1390_s3 }
 0x527   :  { %v389_v61 = vpop.permute.xlu0 %388 }
 0x528   :  { %v391_v62 = vmul.f32 %v389_v61, %v374_v52 }
 0x52a   :  { %395 = vrot.lane.b32.xlu1 %v391_v62, %s1391_s23 }
 0x59c   :  { %v396_v1 = vpop.permute.xlu1 %395 }
 0x59d   :  { %1214 = vmatmul.mubr.msk.f32.vlgmr.msra.gmra.mrb[4].mxu1 %vm197_vm4, %v396_v1 }
 0x59e   :  { %1320 = vmatpush3.bf16.msra.mxu1 %v1454_v12  ;;  %1235 = vmatprep.mubr.msk.f32.mxu1 %vm1387_vm1, %v1388_v7 }
 0x59f   :  { %1321 = vmatprep.subr.bf16.mxu1 %v1386_v3 }
 0x5a2   :  { %1323 = vmatpush3.bf16.msra.mxu1 %v1467_v17 }
 0x5a3   :  { %1330 = vmatprep.subr.bf16.mxu1 %v1386_v3 }
 0x670   :  { %v465_v4 = vpop.f32.mrb[4].mxu1 }
 0x671   :  { %v469_v5 = vadd.f32 %v465_v4, %v151_v2  ;;  %v1215_v6 = vpop.f32.mrb[5].mxu1 }
 0x673   :  { %v470_v8 = vmul.f32 %v469_v5, %v1497_v29  ;;  %v166_v5 = vadd.f32 %v1565_v27, %v1494_v24 }
 0x675   :  { %1362 = vtanh.f32 %v470_v8 }
 0x67f   :  { %v1363_v9 = vpop.eup %1362 }
 0x680   :  { %v472_v10 = vmul.f32 %v1363_v9, %v1497_v29 }
 0x682   :  { %v473_v11 = vadd.f32 %v472_v10, %v1501_v33 }
 0x684   :  { %476 = vrot.lane.b32.xlu0 %v473_v11, %s1390_s3  ;;  %v474_v15 = vmul.f32 %v473_v11, %v385_v57 }
 0x6f6   :  { %v477_v13 = vpop.permute.xlu0 %476 }
 0x6f7   :  { %v479_v14 = vmul.f32 %v477_v13, %v473_v11 }
 0x6f9   :  { %481 = vrot.lane.b32.xlu1 %v479_v14, %s1390_s3 }
 0x76b   :  { %v482_v16 = vpop.permute.xlu1 %481 }
 0x76c   :  { %v484_v18 = vadd.f32 %v482_v16, %v474_v15 }
 0x76e   :  { %1364 = vtanh.f32 %v484_v18 }
 0x778   :  { %v1365_v23 = vpop.eup %1364 }
 0x779   :  { %487 = vrot.lane.b32.xlu0 %v1365_v23, %s1390_s3  ;;  %v171_v23 = vadd.f32 %v1494_v24, %v1569_v31 }
 0x7eb   :  { %v488_v25 = vpop.permute.xlu0 %487 }
 0x7ec   :  { %v490_v26 = vmul.f32 %v488_v25, %v473_v11 }
 0x7ee   :  { %494 = vrot.lane.b32.xlu1 %v490_v26, %s1391_s23 }
 0x860   :  { %v495_v32 = vpop.permute.xlu1 %494 }
 0x861   :  { %1225 = vmatmul.mubr.msk.f32.vlgmr.msra.gmra.mrb[8].mxu0 %vm197_vm4, %v495_v32 }
 0x862   :  { %1326 = vmatpush3.bf16.msra.mxu0 %v1454_v12  ;;  %1246 = vmatprep.mubr.msk.f32.mxu0 %vm1387_vm1, %v1388_v7 }
 0x863   :  { %1327 = vmatprep.subr.bf16.mxu0 %v1386_v3 }
 0x866   :  { %1329 = vmatpush3.bf16.msra.mxu0 %v1467_v17 }
 0x867   :  { %1336 = vmatprep.subr.bf16.mxu0 %v1386_v3 }
 0x934   :  { %v564_v35 = vpop.f32.mrb[8].mxu0 }
 0x935   :  { %v568_v36 = vadd.f32 %v564_v35, %v156_v34  ;;  %v1226_v37 = vpop.f32.mrb[9].mxu0 }
 0x937   :  { %v569_v38 = vmul.f32 %v568_v36, %v1497_v29 }
 0x939   :  { %1366 = vtanh.f32 %v569_v38 }
 0x943   :  { %v1367_v39 = vpop.eup %1366 }
 0x944   :  { %v571_v40 = vmul.f32 %v1367_v39, %v1497_v29 }
 0x946   :  { %v572_v41 = vadd.f32 %v571_v40, %v1501_v33 }
 0x948   :  { %575 = vrot.lane.b32.xlu0 %v572_v41, %s1390_s3  ;;  %v573_v44 = vmul.f32 %v572_v41, %v484_v18 }
 0x9ba   :  { %v576_v42 = vpop.permute.xlu0 %575 }
 0x9bb   :  { %v578_v43 = vmul.f32 %v576_v42, %v572_v41 }
 0x9bd   :  { %580 = vrot.lane.b32.xlu1 %v578_v43, %s1390_s3  ;;  %v176_v43 = vadd.f32 %v1567_v30, %v1494_v24  ;;  %v986_v30 = vld [vmem:[%s1662_s4] sm:$0xff] }
 0xa2f   :  { %v581_v45 = vpop.permute.xlu1 %580 }
 0xa30   :  { %v583_v46 = vadd.f32 %v581_v45, %v573_v44 }
 0xa32   :  { %1368 = vtanh.f32 %v583_v46 }
 0xa3c   :  { %v1369_v47 = vpop.eup %1368 }
 0xa3d   :  { %586 = vrot.lane.b32.xlu0 %v1369_v47, %s1390_s3 }
 0xaaf   :  { %v587_v48 = vpop.permute.xlu0 %586 }
 0xab0   :  { %v589_v49 = vmul.f32 %v587_v48, %v572_v41 }
 0xab2   :  { %593 = vrot.lane.b32.xlu1 %v589_v49, %s1391_s23 }
 0xb24   :  { %v594_v50 = vpop.permute.xlu1 %593 }
 0xb25   :  { %1236 = vmatmul.mubr.msk.f32.vlgmr.msra.gmra.mrb[6].mxu1 %vm197_vm4, %v594_v50 }
 0xb26   :  { %1332 = vmatpush3.bf16.msra.mxu1 %v1454_v12  ;;  %1257 = vmatprep.mubr.msk.f32.mxu1 %vm1387_vm1, %v1388_v7 }
 0xb27   :  { %1333 = vmatprep.subr.bf16.mxu1 %v1386_v3 }
 0xb2a   :  { %1335 = vmatpush3.bf16.msra.mxu1 %v1467_v17 }
 0xb2b   :  { %1342 = vmatprep.subr.bf16.mxu1 %v1386_v3 }
 0xbf8   :  { %v663_v52 = vpop.f32.mrb[6].mxu1 }
 0xbf9   :  { %v667_v53 = vadd.f32 %v663_v52, %v161_v51  ;;  %v1237_v54 = vpop.f32.mrb[7].mxu1 }
 0xbfb   :  { %v668_v55 = vmul.f32 %v667_v53, %v1497_v29 }
 0xbfd   :  { %1370 = vtanh.f32 %v668_v55 }
 0xc07   :  { %v1371_v56 = vpop.eup %1370 }
 0xc08   :  { %v670_v57 = vmul.f32 %v1371_v56, %v1497_v29  ;;  %v989_v56 = vld [vmem:[%s1662_s4 + $0x18] sm:$0xff] }
 0xc0a   :  { %v671_v58 = vadd.f32 %v670_v57, %v1501_v33 }
 0xc0c   :  { %674 = vrot.lane.b32.xlu0 %v671_v58, %s1390_s3  ;;  %v672_v61 = vmul.f32 %v671_v58, %v583_v46 }
 0xc7e   :  { %v675_v59 = vpop.permute.xlu0 %674 }
 0xc7f   :  { %v677_v60 = vmul.f32 %v675_v59, %v671_v58 }
 0xc81   :  { %679 = vrot.lane.b32.xlu1 %v677_v60, %s1390_s3 }
 0xcf3   :  { %v680_v62 = vpop.permute.xlu1 %679 }
 0xcf4   :  { %v682_v63 = vadd.f32 %v680_v62, %v672_v61  ;;  %v1095_v62 = vld [vmem:[%s1663_s5] ss:$0 sm:$0xff] }
 0xcf6   :  { %1372 = vtanh.f32 %v682_v63 }
 0xd00   :  { %v1373_v0 = vpop.eup %1372 }
 0xd01   :  { %685 = vrot.lane.b32.xlu0 %v1373_v0, %s1390_s3 }
 0xd73   :  { %v686_v1 = vpop.permute.xlu0 %685 }
 0xd74   :  { %v688_v2 = vmul.f32 %v686_v1, %v671_v58 }
 0xd76   :  { %692 = vrot.lane.b32.xlu1 %v688_v2, %s1391_s23 }
 0xde8   :  { %v693_v4 = vpop.permute.xlu1 %692 }
 0xde9   :  { %1247 = vmatmul.mubr.msk.f32.vlgmr.msra.gmra.mrb[10].mxu0 %vm197_vm4, %v693_v4 }
 0xdea   :  { %1338 = vmatpush3.bf16.msra.mxu0 %v1454_v12  ;;  %1268 = vmatprep.mubr.msk.f32.mxu0 %vm1387_vm1, %v1388_v7 }
 0xdeb   :  { %1339 = vmatprep.subr.bf16.mxu0 %v1386_v3 }
 0xdee   :  { %1341 = vmatpush3.bf16.msra.mxu0 %v1467_v17 }
 0xebc   :  { %v762_v6 = vpop.f32.mrb[10].mxu0 }
 0xebd   :  { %v766_v8 = vadd.f32 %v762_v6, %v166_v5  ;;  %v1248_v9 = vpop.f32.mrb[11].mxu0 }
 0xebf   :  { %v767_v10 = vmul.f32 %v766_v8, %v1497_v29 }
 0xec1   :  { %1374 = vtanh.f32 %v767_v10 }
 0xecb   :  { %v1375_v11 = vpop.eup %1374 }
 0xecc   :  { %v769_v13 = vmul.f32 %v1375_v11, %v1497_v29 }
 0xece   :  { %v770_v12 = vadd.f32 %v769_v13, %v1501_v33 }
 0xed0   :  { %773 = vrot.lane.b32.xlu0 %v770_v12, %s1390_s3  ;;  %v771_v17 = vmul.f32 %v770_v12, %v682_v63 }
 0xf42   :  { %v774_v14 = vpop.permute.xlu0 %773 }
 0xf43   :  { %v776_v15 = vmul.f32 %v774_v14, %v770_v12 }
 0xf45   :  { %778 = vrot.lane.b32.xlu1 %v776_v15, %s1390_s3 }
 0xfb7   :  { %v779_v16 = vpop.permute.xlu1 %778 }
 0xfb8   :  { %v781_v18 = vadd.f32 %v779_v16, %v771_v17 }
 0xfba   :  { %1376 = vtanh.f32 %v781_v18 }
 0xfc4   :  { %v1377_v19 = vpop.eup %1376 }
 0xfc5   :  { %784 = vrot.lane.b32.xlu0 %v1377_v19, %s1390_s3 }
0x1037   :  { %v785_v20 = vpop.permute.xlu0 %784 }
0x1038   :  { %v787_v21 = vmul.f32 %v785_v20, %v770_v12 }
0x103a   :  { %791 = vrot.lane.b32.xlu1 %v787_v21, %s1391_s23 }
0x10ac   :  { %v792_v22 = vpop.permute.xlu1 %791 }
0x10ad   :  { %1258 = vmatmul.mubr.msk.f32.vlgmr.msra.gmra.mrb[8].mxu1 %vm197_vm4, %v792_v22 }
0x10ae   :  { %1279 = vmatprep.mubr.msk.f32.mxu1 %vm1387_vm1, %v1388_v7 }
0x1180   :  { %v861_v25 = vpop.f32.mrb[8].mxu1 }
0x1181   :  { %v865_v26 = vadd.f32 %v861_v25, %v171_v23  ;;  %v1259_v27 = vpop.f32.mrb[9].mxu1 }
0x1183   :  { %v866_v28 = vmul.f32 %v865_v26, %v1497_v29 }
0x1185   :  { %1378 = vtanh.f32 %v866_v28 }
0x118f   :  { %v1379_v32 = vpop.eup %1378 }
0x1190   :  { %v868_v34 = vmul.f32 %v1379_v32, %v1497_v29 }
0x1192   :  { %v869_v35 = vadd.f32 %v868_v34, %v1501_v33 }
0x1194   :  { %872 = vrot.lane.b32.xlu0 %v869_v35, %s1390_s3  ;;  %v870_v7 = vmul.f32 %v869_v35, %v781_v18 }
0x1206   :  { %v873_v36 = vpop.permute.xlu0 %872 }
0x1207   :  { %v875_v37 = vmul.f32 %v873_v36, %v869_v35 }
0x1209   :  { %877 = vrot.lane.b32.xlu1 %v875_v37, %s1390_s3 }
0x127b   :  { %v878_v38 = vpop.permute.xlu1 %877 }
0x127c   :  { %v880_v31 = vadd.f32 %v878_v38, %v870_v7 }
0x127e   :  { %1380 = vtanh.f32 %v880_v31 }
0x1288   :  { %v1381_v39 = vpop.eup %1380 }
0x1289   :  { %883 = vrot.lane.b32.xlu0 %v1381_v39, %s1390_s3 }
0x12fb   :  { %v884_v40 = vpop.permute.xlu0 %883 }
0x12fc   :  { %v886_v41 = vmul.f32 %v884_v40, %v869_v35 }
0x12fe   :  { %890 = vrot.lane.b32.xlu1 %v886_v41, %s1391_s23 }
0x1370   :  { %v891_v42 = vpop.permute.xlu1 %890 }
0x1371   :  { %1269 = vmatmul.mubr.msk.f32.vlgmr.msra.gmra.mrb[12].mxu0 %vm197_vm4, %v891_v42 }
0x1444   :  { %v960_v44 = vpop.f32.mrb[12].mxu0 }
0x1445   :  { %v964_v45 = vadd.f32 %v960_v44, %v176_v43  ;;  %v1270_v46 = vpop.f32.mrb[13].mxu0 }
0x1447   :  { %v965_v47 = vmul.f32 %v964_v45, %v1497_v29 }
0x1449   :  { %1382 = vtanh.f32 %v965_v47 }
0x1453   :  { %v1383_v48 = vpop.eup %1382 }
0x1454   :  { %v967_v49 = vmul.f32 %v1383_v48, %v1497_v29  ;;  %v987_v29 = vld [vmem:[%s1662_s4 + $0x8] sm:$0xff] }
0x1455   :  { %v1343_v55 = vpack.c.bf16 %v987_v29, %v986_v30 }
0x1456   :  { %v968_v50 = vadd.f32 %v967_v49, %v1501_v33  ;;  %v988_v33 = vld [vmem:[%s1662_s4 + $0x10] sm:$0xff] }
0x1457   :  { %1344 = vmatpush3.bf16.msra.mxu1 %v1343_v55  ;;  %v1346_v57 = vpack.c.bf16 %v989_v56, %v988_v33 }
0x1458   :  { %971 = vrot.lane.b32.xlu0 %v968_v50, %s1390_s3  ;;  %v969_v53 = vmul.f32 %v968_v50, %v880_v31  ;;  %1345 = vmatprep.subr.bf16.mxu1 %v1386_v3 }
0x145b   :  { %1347 = vmatpush3.bf16.msra.mxu1 %v1346_v57 }
0x14ca   :  { %v972_v51 = vpop.permute.xlu0 %971 }
0x14cb   :  { %v974_v52 = vmul.f32 %v972_v51, %v968_v50 }
0x14cd   :  { %976 = vrot.lane.b32.xlu1 %v974_v52, %s1390_s3 }
0x153f   :  { %v977_v54 = vpop.permute.xlu1 %976 }
0x1540   :  { %v979_v24 = vadd.f32 %v977_v54, %v969_v53 }
0x1542   :  { %1384 = vtanh.f32 %v979_v24 }
0x154c   :  { %v1385_v58 = vpop.eup %1384 }
0x154d   :  { %982 = vrot.lane.b32.xlu0 %v1385_v58, %s1390_s3 }
0x15bf   :  { %v983_v59 = vpop.permute.xlu0 %982 }
0x15c0   :  { %v985_v60 = vmul.f32 %v983_v59, %v968_v50 }
0x15c2   :  { %998 = vrot.lane.b32.xlu1 %v985_v60, %s1391_s23 }
0x1634   :  { %v999_v61 = vpop.permute.xlu1 %998 }
0x1635   :  { %1280 = vmatmul.mubr.msk.f32.vlgmr.msra.gmra.mrb[10].mxu1 %vm197_vm4, %v999_v61 }
0x1708   :  { %v1068_v63 = vpop.f32.mrb[10].mxu1 }
0x1709   :  { %v1069_v0 = vadd.f32 %v1095_v62, %v1068_v63  ;;  %v1281_v1 = vpop.f32.mrb[11].mxu1 }
0x170b   :  { %1073 = vst.msk [vmem:[%s1664_s6] sm:$0xff] %vm1072_vm5, %v1069_v0 }

</bundles_post_ra>
